<compile_context>
chip_gen: v7x
topology: tpu7x:2x2x1
jax: 0.10.0
libtpu: 0.0.40
codegen_flags: <defaults>
</compile_context>

<pallas_src>
import jax
import jax.numpy as jnp
from jax.experimental import pallas as pl
from jax.experimental.pallas import tpu as pltpu


def channel_mixing_kernel(xk_ref, xr_ref, wk_ref, wr_ref, wv_ref,
                          bk_ref, br_ref, bv_ref,
                          y_ref,
                          sig_r_ref, acc_ref):
    """One grid step processes a TK-wide slice of the hidden dimension."""
    l = pl.program_id(0)
    tk = wk_ref.shape[1]
    d = bk_ref.shape[1]
    f32 = jnp.float32

    # --- init (first step): seed the accumulator with bv ---------------------
    @pl.when(l == 0)
    def _init():
        acc_ref[...] = jnp.zeros_like(acc_ref) + bv_ref[...]

    # --- per-step column slices of k and r (f32 accumulation on the MXU) -----
    k_t = jnp.dot(xk_ref[...], wk_ref[...], preferred_element_type=f32)
    r_t = jnp.dot(xr_ref[...], wr_ref[...], preferred_element_type=f32)

    if tk == d:                                   # single-step grid: full refs
        k_t = k_t + bk_ref[...]
        r_t = r_t + br_ref[...]
        sig_r_ref[...] = jax.nn.sigmoid(r_t)      # EUP work done in-loop
    else:                                         # 128-aligned dynamic lane offset
        off = pl.multiple_of(l * tk, 128)
        k_t = k_t + bk_ref[:, pl.ds(off, tk)]
        r_t = r_t + br_ref[:, pl.ds(off, tk)]
        sig_r_ref[:, pl.ds(off, tk)] = jax.nn.sigmoid(r_t)

    # --- accumulate vk += relu(k_tile)^2 @ Wv[l, :] ---------------------------
    rk = jnp.maximum(k_t, 0.0)
    rk2 = rk * rk                                 # squared-relu stays f32
    acc_ref[...] += jnp.dot(rk2.astype(wv_ref.dtype), wv_ref[...],
                            preferred_element_type=f32)

    # --- finalize (last step): y = sigmoid(r) * vk ----------------------------
    @pl.when(l == pl.num_programs(0) - 1)
    def _finalize():
        y_ref[...] = (sig_r_ref[...] * acc_ref[...]).astype(y_ref.dtype)


def _vmem_budget_bytes() -> int:
    """Generation-aware VMEM budget (leave headroom for compiler scratch)."""
    try:
        cap = int(pltpu.get_tpu_info().vmem_capacity_bytes)
    except Exception:
        cap = 64 << 20                            # assume the smaller v7x VMEM
    return int(max(min(cap - (12 << 20), 100 << 20), 32 << 20))


def _vmem_estimate(n_rows: int, d: int, tk: int, w_bytes: int) -> int:
    weights = 2 * 3 * d * tk * w_bytes            # Wk/Wr/Wv tiles, double-buffered
    acts = 2 * 2 * n_rows * d * w_bytes           # xk / xr residents (weight dtype)
    biases = 2 * 3 * d * 4                        # bk / br / bv residents (f32)
    out = 2 * n_rows * d * 4                      # y output block
    scratch = 2 * n_rows * d * 4                  # sigmoid(r) + accumulator
    return weights + acts + biases + out + scratch + (2 << 20)


def _pick_tk(d: int, n_rows: int, w_bytes: int, budget: int, max_tk=None) -> int:
    """Largest 128-multiple divisor of D fitting the VMEM budget (>=256 for bf16)."""
    cands = [c for c in range(128, d + 1, 128) if d % c == 0]
    if max_tk is not None:
        cands = [c for c in cands if c <= max_tk]
    if not cands:
        return d                                  # small / odd D: single full step
    min_tk = 256 if w_bytes < 4 else 128          # keep Wk/Wr DMA row bursts >= 512 B
    fit = [c for c in cands if _vmem_estimate(n_rows, d, c, w_bytes) <= budget]
    tk = max(fit) if fit else min(cands)
    if tk < min_tk:
        bigger = [c for c in fit if c >= min_tk] or [c for c in cands if c >= min_tk]
        if bigger:
            tk = min(bigger)
    return tk


def channel_mixing(x, last_x, mix_k, mix_r, wk, bk, wr, br, wv, bv,
                   *, weight_dtype=jnp.bfloat16, max_tk=None):
    """x: (..., D) f32. Weights (D, D) stored as (in, out). Returns (y, new_last_x).

    All leading dims of x are flattened into rows (padded to a multiple of 8):
    batching many tokens per call amortizes the 3*D^2 weight stream and is the
    dominant perf lever at small batch.
    """
    f32 = jnp.float32
    orig_shape = x.shape
    D = orig_shape[-1]
    x2 = jnp.asarray(x, f32).reshape(-1, D)
    N = x2.shape[0]

    last_x = jnp.asarray(last_x, f32).reshape(-1, D)
    mix_k = jnp.asarray(mix_k, f32).reshape(1, D)
    mix_r = jnp.asarray(mix_r, f32).reshape(1, D)
    bk = jnp.asarray(bk, f32).reshape(1, D)
    br = jnp.asarray(br, f32).reshape(1, D)
    bv = jnp.asarray(bv, f32).reshape(1, D)

    # Precompute the mixed activations once; hand the kernel weight-dtype
    # residents so there is no per-step recast / reload of xk, xr.
    xk = (x2 * mix_k + last_x * (1.0 - mix_k)).astype(weight_dtype)
    xr = (x2 * mix_r + last_x * (1.0 - mix_r)).astype(weight_dtype)

    # Pad rows to a sublane multiple so blocks stay (8,128)-aligned.
    pad = (-N) % 8
    if pad:
        xk = jnp.pad(xk, ((0, pad), (0, 0)))
        xr = jnp.pad(xr, ((0, pad), (0, 0)))
    Bp = N + pad

    # Stream weights in reduced precision; accumulation stays f32 in-kernel.
    wk = wk.astype(weight_dtype)
    wr = wr.astype(weight_dtype)
    wv = wv.astype(weight_dtype)
    w_bytes = jnp.dtype(weight_dtype).itemsize

    budget = _vmem_budget_bytes()
    tk = _pick_tk(D, Bp, w_bytes, budget, max_tk=max_tk)
    nk = D // tk
    est = _vmem_estimate(Bp, D, tk, w_bytes)
    vmem_limit = int(min(max(int(1.2 * est), 32 << 20), budget))

    resident = lambda shape: pl.BlockSpec(shape, lambda l: (0, 0))

    grid_spec = pltpu.PrefetchScalarGridSpec(
        num_scalar_prefetch=0,
        grid=(nk,),
        in_specs=[
            resident((Bp, D)),                          # xk (weight dtype, resident)
            resident((Bp, D)),                          # xr
            pl.BlockSpec((D, tk), lambda l: (0, l)),    # Wk column tile (streamed)
            pl.BlockSpec((D, tk), lambda l: (0, l)),    # Wr column tile (streamed)
            pl.BlockSpec((tk, D), lambda l: (l, 0)),    # Wv row tile    (streamed)
            resident((1, D)),                           # bk (resident, sliced in-kernel)
            resident((1, D)),                           # br
            resident((1, D)),                           # bv (folded into acc init)
        ],
        out_specs=resident((Bp, D)),                    # y, written on the last step
        scratch_shapes=[
            pltpu.VMEM((Bp, D), f32),                   # sigmoid(r)
            pltpu.VMEM((Bp, D), f32),                   # vk accumulator (seeded w/ bv)
        ],
    )

    y = pl.pallas_call(
        channel_mixing_kernel,
        out_shape=jax.ShapeDtypeStruct((Bp, D), f32),
        grid_spec=grid_spec,
        compiler_params=pltpu.CompilerParams(
            dimension_semantics=("arbitrary",),
            vmem_limit_bytes=vmem_limit,
        ),
    )(xk, xr, wk, wr, wv, bk, br, bv)

    y = y[:N].reshape(orig_shape)

    # TODO(synk): the module stores self.last_x = x (full tensor) and broadcasts
    # it next call; we mirror that exactly rather than a per-token time shift.
    new_last_x = x
    return y, new_last_x


def channel_mixing_ref(x, last_x, mix_k, mix_r, wk, bk, wr, br, wv, bv,
                       weight_dtype=jnp.float32):
    """Pure-JAX reference mirroring the kernel's precision choices."""
    f32 = jnp.float32
    x = jnp.asarray(x, f32)
    last_x = jnp.asarray(last_x, f32)
    cast = lambda a: a.astype(weight_dtype)
    xk = x * mix_k + last_x * (1.0 - mix_k)
    xr = x * mix_r + last_x * (1.0 - mix_r)
    k = jnp.dot(cast(xk), cast(wk), preferred_element_type=f32) + bk
    r = jnp.dot(cast(xr), cast(wr), preferred_element_type=f32) + br
    rk2 = jnp.maximum(k, 0.0) ** 2
    vk = jnp.dot(cast(rk2), cast(wv), preferred_element_type=f32) + bv
    return jax.nn.sigmoid(r) * vk


def _make_inputs(key, B, D):
    keys = jax.random.split(key, 10)
    x = jax.random.normal(keys[0], (B, D), dtype=jnp.float32)
    # Module inits last_x/mix_k/mix_r to zeros; use non-trivial values so the
    # mixing path is exercised.
    last_x = jax.random.normal(keys[1], (1, D), dtype=jnp.float32)
    mix_k = jax.random.uniform(keys[2], (1, D), dtype=jnp.float32)
    mix_r = jax.random.uniform(keys[3], (1, D), dtype=jnp.float32)
    scale = float(1.0 / (D ** 0.5))
    u = lambda k, s: jax.random.uniform(k, s, minval=-scale, maxval=scale,
                                        dtype=jnp.float32)
    wk, bk = u(keys[4], (D, D)), u(keys[5], (1, D))
    wr, br = u(keys[6], (D, D)), u(keys[7], (1, D))
    wv, bv = u(keys[8], (D, D)), u(keys[9], (1, D))
    return x, last_x, mix_k, mix_r, wk, bk, wr, br, wv, bv


if __name__ == "__main__":
    key = jax.random.PRNGKey(0)

    # Case 1: small aligned shape, bf16 weights (default perf path), 1 grid step.
    args1 = _make_inputs(key, B=8, D=128)
    y1, _ = channel_mixing(*args1, weight_dtype=jnp.bfloat16)
    y1 = jax.block_until_ready(y1)
    ref1 = channel_mixing_ref(*args1, weight_dtype=jnp.bfloat16)
    assert jnp.allclose(y1, ref1, atol=2e-2, rtol=2e-2), "bf16 kernel mismatch"

    # Case 2: multi-step reduction grid (D=256, TK=128 -> 2 steps), f32 weights.
    args2 = _make_inputs(jax.random.PRNGKey(1), B=16, D=256)
    y2, _ = channel_mixing(*args2, weight_dtype=jnp.float32, max_tk=128)
    y2 = jax.block_until_ready(y2)
    ref2 = channel_mixing_ref(*args2, weight_dtype=jnp.float32)
    assert jnp.allclose(y2, ref2, atol=1e-4, rtol=1e-4), "f32 kernel mismatch"

    # Case 3: row padding (B=4 -> 8) + bf16 multi-step (D=512, TK=256 -> 2 steps).
    args3 = _make_inputs(jax.random.PRNGKey(2), B=4, D=512)
    y3, _ = channel_mixing(*args3, weight_dtype=jnp.bfloat16, max_tk=256)
    y3 = jax.block_until_ready(y3)
    ref3 = channel_mixing_ref(*args3, weight_dtype=jnp.bfloat16)
    assert jnp.allclose(y3, ref3, atol=2e-2, rtol=2e-2), "padded bf16 kernel mismatch"

    print("KERNEL_OK")
</pallas_src>

<mosaic_0001>
module attributes {stable_mosaic.version = 11 : i64} {
  func.func @channel_mixing_kernel(%arg0: i32, %arg1: memref<8x128xbf16, #tpu.memory_space<vmem>>, %arg2: memref<8x128xbf16, #tpu.memory_space<vmem>>, %arg3: memref<128x128xbf16, #tpu.memory_space<vmem>>, %arg4: memref<128x128xbf16, #tpu.memory_space<vmem>>, %arg5: memref<128x128xbf16, #tpu.memory_space<vmem>>, %arg6: memref<1x128xf32, #tpu.memory_space<vmem>>, %arg7: memref<1x128xf32, #tpu.memory_space<vmem>>, %arg8: memref<1x128xf32, #tpu.memory_space<vmem>>, %arg9: memref<8x128xf32, #tpu.memory_space<vmem>>, %arg10: memref<8x128xf32, #tpu.memory_space<vmem>>, %arg11: memref<8x128xf32, #tpu.memory_space<vmem>>) attributes {dimension_semantics = [#tpu.dimension_semantics<arbitrary>], iteration_bounds = array<i64: 1>, scalar_prefetch = 0 : i64, scratch_operands = 2 : i64, tpu.core_type = #tpu.core_type<tc>, window_params = [{pipeline_mode = #tpu.pipeline_mode<synchronous>, transform_indices = @transform_0, window_bounds = array<i64: 8, 128>}, {pipeline_mode = #tpu.pipeline_mode<synchronous>, transform_indices = @transform_1, window_bounds = array<i64: 8, 128>}, {transform_indices = @transform_2, window_bounds = array<i64: 128, 128>}, {transform_indices = @transform_3, window_bounds = array<i64: 128, 128>}, {transform_indices = @transform_4, window_bounds = array<i64: 128, 128>}, {pipeline_mode = #tpu.pipeline_mode<synchronous>, transform_indices = @transform_5, window_bounds = array<i64: 1, 128>}, {pipeline_mode = #tpu.pipeline_mode<synchronous>, transform_indices = @transform_6, window_bounds = array<i64: 1, 128>}, {pipeline_mode = #tpu.pipeline_mode<synchronous>, transform_indices = @transform_7, window_bounds = array<i64: 1, 128>}, {pipeline_mode = #tpu.pipeline_mode<synchronous>, transform_indices = @transform_8, window_bounds = array<i64: 8, 128>}]} {
    %c0_i32 = arith.constant 0 : i32
    %0 = arith.cmpi eq, %arg0, %c0_i32 : i32
    %1 = arith.extui %0 : i1 to i32
    %c0_i32_0 = arith.constant 0 : i32
    %2 = arith.cmpi ne, %1, %c0_i32_0 : i32
    scf.if %2 {
      %cst_26 = arith.constant 0.000000e+00 : f32
      %33 = vector.broadcast %cst_26 : f32 to vector<8x128xf32>
      %c0_27 = arith.constant 0 : index
      %c0_28 = arith.constant 0 : index
      %34 = vector.load %arg8[%c0_27, %c0_28] : memref<1x128xf32, #tpu.memory_space<vmem>>, vector<1x128xf32>
      %35 = vector.broadcast %34 : vector<1x128xf32> to vector<8x128xf32>
      %36 = arith.addf %33, %35 : vector<8x128xf32>
      %c0_29 = arith.constant 0 : index
      %c0_30 = arith.constant 0 : index
      %37 = vector.load %arg11[%c0_29, %c0_30] : memref<8x128xf32, #tpu.memory_space<vmem>>, vector<8x128xf32>
      tpu.vector_store %arg11[%c0_29, %c0_30], %36 {strides = array<i32>} : memref<8x128xf32, #tpu.memory_space<vmem>>, vector<8x128xf32>,
    } else {
    }
    %c0 = arith.constant 0 : index
    %c0_1 = arith.constant 0 : index
    %3 = vector.load %arg1[%c0, %c0_1] : memref<8x128xbf16, #tpu.memory_space<vmem>>, vector<8x128xbf16>
    %c0_2 = arith.constant 0 : index
    %c0_3 = arith.constant 0 : index
    %4 = vector.load %arg3[%c0_2, %c0_3] : memref<128x128xbf16, #tpu.memory_space<vmem>>, vector<128x128xbf16>
    %cst = arith.constant dense<0.000000e+00> : vector<8x128xf32>
    %5 = tpu.matmul %3, %4, %cst {dimension_numbers = #tpu.dot_dimension_numbers<[1], [0], [0], [1], [0, 0, 1, 1], [], []>} : vector<8x128xbf16>, vector<128x128xbf16>, vector<8x128xf32> -> vector<8x128xf32>
    %c0_4 = arith.constant 0 : index
    %c0_5 = arith.constant 0 : index
    %6 = vector.load %arg2[%c0_4, %c0_5] : memref<8x128xbf16, #tpu.memory_space<vmem>>, vector<8x128xbf16>
    %c0_6 = arith.constant 0 : index
    %c0_7 = arith.constant 0 : index
    %7 = vector.load %arg4[%c0_6, %c0_7] : memref<128x128xbf16, #tpu.memory_space<vmem>>, vector<128x128xbf16>
    %cst_8 = arith.constant dense<0.000000e+00> : vector<8x128xf32>
    %8 = tpu.matmul %6, %7, %cst_8 {dimension_numbers = #tpu.dot_dimension_numbers<[1], [0], [0], [1], [0, 0, 1, 1], [], []>} : vector<8x128xbf16>, vector<128x128xbf16>, vector<8x128xf32> -> vector<8x128xf32>
    %c0_9 = arith.constant 0 : index
    %c0_10 = arith.constant 0 : index
    %9 = vector.load %arg6[%c0_9, %c0_10] : memref<1x128xf32, #tpu.memory_space<vmem>>, vector<1x128xf32>
    %10 = vector.broadcast %9 : vector<1x128xf32> to vector<8x128xf32>
    %11 = arith.addf %5, %10 : vector<8x128xf32>
    %c0_11 = arith.constant 0 : index
    %c0_12 = arith.constant 0 : index
    %12 = vector.load %arg7[%c0_11, %c0_12] : memref<1x128xf32, #tpu.memory_space<vmem>>, vector<1x128xf32>
    %13 = vector.broadcast %12 : vector<1x128xf32> to vector<8x128xf32>
    %14 = arith.addf %8, %13 : vector<8x128xf32>
    %15 = arith.negf %14 : vector<8x128xf32>
    %16 = math.exp %15 : vector<8x128xf32>
    %cst_13 = arith.constant 1.000000e+00 : f32
    %17 = vector.broadcast %cst_13 : f32 to vector<8x128xf32>
    %18 = arith.addf %17, %16 : vector<8x128xf32>
    %19 = arith.divf %17, %18 : vector<8x128xf32>
    %c0_14 = arith.constant 0 : index
    %c0_15 = arith.constant 0 : index
    %20 = vector.load %arg10[%c0_14, %c0_15] : memref<8x128xf32, #tpu.memory_space<vmem>>, vector<8x128xf32>
    tpu.vector_store %arg10[%c0_14, %c0_15], %19 {strides = array<i32>} : memref<8x128xf32, #tpu.memory_space<vmem>>, vector<8x128xf32>,
    %cst_16 = arith.constant 0.000000e+00 : f32
    %21 = vector.broadcast %cst_16 : f32 to vector<8x128xf32>
    %22 = arith.maximumf %11, %21 : vector<8x128xf32>
    %23 = arith.mulf %22, %22 : vector<8x128xf32>
    %c0_17 = arith.constant 0 : index
    %c0_18 = arith.constant 0 : index
    %24 = vector.load %arg11[%c0_17, %c0_18] : memref<8x128xf32, #tpu.memory_space<vmem>>, vector<8x128xf32>
    %25 = arith.truncf %23 : vector<8x128xf32> to vector<8x128xbf16>
    %c0_19 = arith.constant 0 : index
    %c0_20 = arith.constant 0 : index
    %26 = vector.load %arg5[%c0_19, %c0_20] : memref<128x128xbf16, #tpu.memory_space<vmem>>, vector<128x128xbf16>
    %cst_21 = arith.constant dense<0.000000e+00> : vector<8x128xf32>
    %27 = tpu.matmul %25, %26, %cst_21 {dimension_numbers = #tpu.dot_dimension_numbers<[1], [0], [0], [1], [0, 0, 1, 1], [], []>} : vector<8x128xbf16>, vector<128x128xbf16>, vector<8x128xf32> -> vector<8x128xf32>
    %28 = arith.addf %24, %27 : vector<8x128xf32>
    %c0_22 = arith.constant 0 : index
    %c0_23 = arith.constant 0 : index
    %29 = vector.load %arg11[%c0_22, %c0_23] : memref<8x128xf32, #tpu.memory_space<vmem>>, vector<8x128xf32>
    tpu.vector_store %arg11[%c0_22, %c0_23], %28 {strides = array<i32>} : memref<8x128xf32, #tpu.memory_space<vmem>>, vector<8x128xf32>,
    %c0_i32_24 = arith.constant 0 : i32
    %30 = arith.cmpi eq, %arg0, %c0_i32_24 : i32
    %31 = arith.extui %30 : i1 to i32
    %c0_i32_25 = arith.constant 0 : i32
    %32 = arith.cmpi ne, %31, %c0_i32_25 : i32
    scf.if %32 {
      %c0_26 = arith.constant 0 : index
      %c0_27 = arith.constant 0 : index
      %33 = vector.load %arg10[%c0_26, %c0_27] : memref<8x128xf32, #tpu.memory_space<vmem>>, vector<8x128xf32>
      %c0_28 = arith.constant 0 : index
      %c0_29 = arith.constant 0 : index
      %34 = vector.load %arg11[%c0_28, %c0_29] : memref<8x128xf32, #tpu.memory_space<vmem>>, vector<8x128xf32>
      %35 = arith.mulf %33, %34 : vector<8x128xf32>
      %c0_30 = arith.constant 0 : index
      %c0_31 = arith.constant 0 : index
      %36 = vector.load %arg9[%c0_30, %c0_31] : memref<8x128xf32, #tpu.memory_space<vmem>>, vector<8x128xf32>
      tpu.vector_store %arg9[%c0_30, %c0_31], %35 {strides = array<i32>} : memref<8x128xf32, #tpu.memory_space<vmem>>, vector<8x128xf32>,
    } else {
    }
    return
  }
  func.func @transform_0(%arg0: i32) -> (i32, i32) {
    %c0_i32 = arith.constant 0 : i32
    %c0_i32_0 = arith.constant 0 : i32
    %c0_i32_1 = arith.constant 0 : i32
    return %c0_i32, %c0_i32_0 : i32, i32
  }
  func.func @transform_1(%arg0: i32) -> (i32, i32) {
    %c0_i32 = arith.constant 0 : i32
    %c0_i32_0 = arith.constant 0 : i32
    %c0_i32_1 = arith.constant 0 : i32
    return %c0_i32, %c0_i32_0 : i32, i32
  }
  func.func @transform_2(%arg0: i32) -> (i32, i32) {
    %c0_i32 = arith.constant 0 : i32
    %c0_i32_0 = arith.constant 0 : i32
    return %c0_i32, %arg0 : i32, i32
  }
  func.func @transform_3(%arg0: i32) -> (i32, i32) {
    %c0_i32 = arith.constant 0 : i32
    %c0_i32_0 = arith.constant 0 : i32
    return %c0_i32, %arg0 : i32, i32
  }
  func.func @transform_4(%arg0: i32) -> (i32, i32) {
    %c0_i32 = arith.constant 0 : i32
    %c0_i32_0 = arith.constant 0 : i32
    return %arg0, %c0_i32 : i32, i32
  }
  func.func @transform_5(%arg0: i32) -> (i32, i32) {
    %c0_i32 = arith.constant 0 : i32
    %c0_i32_0 = arith.constant 0 : i32
    %c0_i32_1 = arith.constant 0 : i32
    return %c0_i32, %c0_i32_0 : i32, i32
  }
  func.func @transform_6(%arg0: i32) -> (i32, i32) {
    %c0_i32 = arith.constant 0 : i32
    %c0_i32_0 = arith.constant 0 : i32
    %c0_i32_1 = arith.constant 0 : i32
    return %c0_i32, %c0_i32_0 : i32, i32
  }
  func.func @transform_7(%arg0: i32) -> (i32, i32) {
    %c0_i32 = arith.constant 0 : i32
    %c0_i32_0 = arith.constant 0 : i32
    %c0_i32_1 = arith.constant 0 : i32
    return %c0_i32, %c0_i32_0 : i32, i32
  }
  func.func @transform_8(%arg0: i32) -> (i32, i32) {
    %c0_i32 = arith.constant 0 : i32
    %c0_i32_0 = arith.constant 0 : i32
    %c0_i32_1 = arith.constant 0 : i32
    return %c0_i32, %c0_i32_0 : i32, i32
  }
}

</mosaic_0001>

<bundles_post_ra>
// kernel: tpu_custom_call.1
= control target key start
LH: loop header
LB: loop body
LE: loop exit
PB: predicated region body
PF: predicated region fallthrough
CT: control target
= control target key end

     0   :  { %13 = vsyncpa [#allocation5], 0  ;;  %s941_s0 = inlined_call_operand.hbm [shape: bf16[8,128], index: 0, kind: input, shape index: {}]   ;;  %s942_s1 = inlined_call_operand.hbm [shape: bf16[8,128], index: 1, kind: input, shape index: {}]   ;;  %s943_s2 = inlined_call_operand.hbm [shape: bf16[128,128], index: 2, kind: input, shape index: {}]   ;;  %s944_s3 = inlined_call_operand.hbm [shape: bf16[128,128], index: 3, kind: input, shape index: {}]   ;;  %s945_s4 = inlined_call_operand.hbm [shape: bf16[128,128], index: 4, kind: input, shape index: {}]   ;;  %s946_s5 = inlined_call_operand.vmem [shape: f32[1,128], index: 5, kind: input, shape index: {}]   ;;  %s947_s6 = inlined_call_operand.vmem [shape: f32[1,128], index: 6, kind: input, shape index: {}]   ;;  %s948_s7 = inlined_call_operand.vmem [shape: f32[1,128], index: 7, kind: input, shape index: {}]   ;;  %s949_s8 = inlined_call_operand.hbm [shape: f32[8,128], index: 8, kind: output, shape index: {}]  }
   0x1   :  { %14 = vsyncpa [#allocation8], 0 }
   0x2   :  { %15 = vsyncpa [#allocation11], 0 }
   0x3   :  { %16 = vsyncpa [#allocation6], 0  ;;  %s766_s27 = smov [#allocation7]   ;;  %s626_s9 = scalar_lea.hbm %s942_s1, 64 }
   0x4   :  { %s33_s28 = sshll.u32 %s766_s27, 4  ;;  %p627_p0 = scmp.ne.s32.totalorder %s942_s1, %s626_s9  ;;  %s34_s28 = int_to_ptr.vmem [resolvable:$true] %s33_s28 }
   0x5   :  { %p630_p1 = scmp.lt.u32.totalorder %s626_s9, %s942_s1 }
   0x7   :  { %p632_p2 = pnand %p630_p1, %p627_p0 }
   0x9   :  { %635 = shalt.err (!%p632_p2)
}
   0xa   :  { %s636_s14 = scalar_lea.vmem %s34_s28, 64  ;;  %p641_p4 = scmp.lt.s32.totalorder %s34_s28, %s34_s28 }
   0xb   :  { %p637_p3 = scmp.ne.s32.totalorder %s34_s28, %s636_s14  ;;  %p642_p5 = scmp.lt.s32.totalorder %s636_s14, %s636_s14 }
   0xd   :  { %p643_p6 = por %p642_p5, %p641_p4 }
   0xf   :  { %p644_p7 = pnand %p643_p6, %p637_p3 }
  0x11   :  { %647 = shalt.err (!%p644_p7)
}
  0x12   :  { %36 = dma.hbm_to_vmem [thread:$0]  %s942_s1, 64, %s34_s28, [#allocation8]  }
  0x13   :  { %s767_s17 = smov [#allocation10]   ;;  %s768_s19 = smov [#allocation4]  }
  0x14   :  { %s54_s18 = sshll.u32 %s767_s17, 4  ;;  %s23_s20 = sshll.u32 %s768_s19, 4  ;;  %s55_s18 = int_to_ptr.vmem [resolvable:$true] %s54_s18  ;;  %s24_s20 = int_to_ptr.vmem [resolvable:$true] %s23_s20 }
  0x15   :  { %s648_s23 = scalar_lea.hbm %s944_s3, 1024 }
  0x16   :  { %p649_p8 = scmp.ne.s32.totalorder %s944_s3, %s648_s23  ;;  %p652_p9 = scmp.lt.u32.totalorder %s648_s23, %s944_s3 }
  0x18   :  { %p654_p10 = pnand %p652_p9, %p649_p8 }
  0x1a   :  { %657 = shalt.err (!%p654_p10)
}
  0x1b   :  { %s658_s1 = scalar_lea.vmem %s55_s18, 1024  ;;  %p663_p12 = scmp.lt.s32.totalorder %s55_s18, %s55_s18 }
  0x1c   :  { %p659_p11 = scmp.ne.s32.totalorder %s55_s18, %s658_s1  ;;  %p664_p13 = scmp.lt.s32.totalorder %s658_s1, %s658_s1 }
  0x1e   :  { %p665_p0 = por %p664_p13, %p663_p12 }
  0x20   :  { %p666_p1 = pnand %p665_p0, %p659_p11 }
  0x22   :  { %669 = shalt.err (!%p666_p1)
}
  0x23   :  { %s769_s28 = smov 64   ;;  %s770_s29 = smov 4  }
  0x24   :  { %60 = dma.hbm_to_vmem [thread:$0]  %s944_s3, 1024, %s55_s18, [#allocation11], %s769_s28, %s769_s28, %s770_s29  }
  0x25   :  { %s670_s12 = scalar_lea.hbm %s941_s0, 64 }
  0x26   :  { %p671_p2 = scmp.ne.s32.totalorder %s941_s0, %s670_s12  ;;  %p674_p3 = scmp.lt.u32.totalorder %s670_s12, %s941_s0 }
  0x28   :  { %p676_p4 = pnand %p674_p3, %p671_p2 }
  0x2a   :  { %679 = shalt.err (!%p676_p4)
}
  0x2b   :  { %s680_s17 = scalar_lea.vmem %s24_s20, 64  ;;  %p685_p6 = scmp.lt.s32.totalorder %s24_s20, %s24_s20 }
  0x2c   :  { %p681_p5 = scmp.ne.s32.totalorder %s24_s20, %s680_s17  ;;  %p686_p7 = scmp.lt.s32.totalorder %s680_s17, %s680_s17 }
  0x2e   :  { %p687_p8 = por %p686_p7, %p685_p6 }
  0x30   :  { %p688_p9 = pnand %p687_p8, %p681_p5 }
  0x32   :  { %691 = shalt.err (!%p688_p9)
}
  0x33   :  { %26 = dma.hbm_to_vmem [thread:$0]  %s941_s0, 64, %s24_s20, [#allocation5]  }
  0x34   :  { %s771_s19 = smov [#allocation9]   ;;  %s772_s22 = smov [#allocation12]  }
  0x35   :  { %s42_s21 = sshll.u32 %s771_s19, 4  ;;  %s66_s23 = sshll.u32 %s772_s22, 4  ;;  %s43_s21 = int_to_ptr.vmem [resolvable:$true] %s42_s21  ;;  %s67_s23 = int_to_ptr.vmem [resolvable:$true] %s66_s23 }
  0x36   :  { %s692_s26 = scalar_lea.hbm %s943_s2, 1024 }
  0x37   :  { %p693_p10 = scmp.ne.s32.totalorder %s943_s2, %s692_s26  ;;  %p696_p11 = scmp.lt.u32.totalorder %s692_s26, %s943_s2 }
  0x39   :  { %p698_p12 = pnand %p696_p11, %p693_p10 }
  0x3b   :  { %701 = shalt.err (!%p698_p12)
}
  0x3c   :  { %s702_s0 = scalar_lea.vmem %s43_s21, 1024  ;;  %p707_p0 = scmp.lt.s32.totalorder %s43_s21, %s43_s21 }
  0x3d   :  { %p703_p13 = scmp.ne.s32.totalorder %s43_s21, %s702_s0  ;;  %p708_p1 = scmp.lt.s32.totalorder %s702_s0, %s702_s0 }
  0x3f   :  { %p709_p2 = por %p708_p1, %p707_p0 }
  0x41   :  { %p710_p3 = pnand %p709_p2, %p703_p13 }
  0x43   :  { %713 = shalt.err (!%p710_p3)
}
  0x44   :  { %48 = dma.hbm_to_vmem [thread:$0]  %s943_s2, 1024, %s43_s21, [#allocation8], %s769_s28, %s769_s28, %s770_s29  }
  0x45   :  { %s714_s13 = scalar_lea.hbm %s945_s4, 1024 }
  0x46   :  { %p715_p4 = scmp.ne.s32.totalorder %s945_s4, %s714_s13  ;;  %p718_p5 = scmp.lt.u32.totalorder %s714_s13, %s945_s4 }
  0x48   :  { %p720_p6 = pnand %p718_p5, %p715_p4 }
  0x4a   :  { %723 = shalt.err (!%p720_p6)
}
  0x4b   :  { %s724_s3 = scalar_lea.vmem %s67_s23, 1024  ;;  %p729_p8 = scmp.lt.s32.totalorder %s67_s23, %s67_s23 }
  0x4c   :  { %p725_p7 = scmp.ne.s32.totalorder %s67_s23, %s724_s3  ;;  %p730_p9 = scmp.lt.s32.totalorder %s724_s3, %s724_s3 }
  0x4e   :  { %p731_p10 = por %p730_p9, %p729_p8 }
  0x50   :  { %p732_p11 = pnand %p731_p10, %p725_p7 }
  0x52   :  { %735 = shalt.err (!%p732_p11)
}
  0x53   :  { %72 = dma.hbm_to_vmem [thread:$0]  %s945_s4, 1024, %s67_s23, [#allocation11], %s769_s28, %s769_s28, %s770_s29  }
  0x54   :  { %758 = dma.done.wait [#allocation5], 64  }
  0x55   :  { %759 = vsyncadd [#allocation5], 4294967232 }
  0x56   :  { %760 = dma.done.wait [#allocation8], 1088  }
  0x57   :  { %761 = vsyncadd [#allocation8], 4294966208 }
  0x58   :  { %762 = dma.done.wait [#allocation11], 2048  }
  0x59   :  { %763 = vsyncadd [#allocation11], 4294965248  ;;  %v773_v0 = vmov 0.0   ;;  %vm774_vm0 = vmmov 0   ;;  %v598_v1 = vld [vmem:[#allocation9] sm:$0xff]   ;;  %v599_v2 = vld [vmem:[#allocation9 + $0x8] sm:$0xff]  }
  0x5a   :  { %528 = vmatprep.subr.bf16.mxu0 %v773_v0  ;;  %544 = vmatprep.mubr.msk.bf16.mxu0 %vm774_vm0, %v773_v0  ;;  %v600_v3 = vld [vmem:[#allocation9 + $0x10] sm:$0xff]   ;;  %v606_v4 = vld [vmem:[#allocation10] sm:$0xff]   ;;  %v601_v5 = vld [vmem:[#allocation9 + $0x18] sm:$0xff]   ;;  %s775_s22 = smov [#allocation13]  }
  0x5b   :  { %548 = vmatprep.subr.bf16.mxu1 %v773_v0  ;;  %564 = vmatprep.mubr.msk.bf16.mxu1 %vm774_vm0, %v773_v0  ;;  %v607_v6 = vld [vmem:[#allocation10 + $0x8] sm:$0xff]   ;;  %v602_v7 = vld [vmem:[#allocation9 + $0x20] sm:$0xff]   ;;  %v608_v8 = vld [vmem:[#allocation10 + $0x10] sm:$0xff]   ;;  %s462_s23 = sshll.u32 %s775_s22, 4  ;;  %s463_s23 = int_to_ptr.vmem [resolvable:$true] %s462_s23 }
  0x5c   :  { %529 = vmatpush3.bf16.msra.mxu0 %v598_v1  ;;  %549 = vmatpush3.bf16.msra.mxu1 %v606_v4  ;;  %v603_v9 = vld [vmem:[#allocation9 + $0x28] sm:$0xff]   ;;  %v609_v10 = vld [vmem:[#allocation10 + $0x18] sm:$0xff]   ;;  %v604_v11 = vld [vmem:[#allocation9 + $0x30] sm:$0xff]   ;;  %p741_p13 = scmp.lt.s32.totalorder %s463_s23, %s463_s23 }
  0x5d   :  { %530 = vmatprep.subr.bf16.mxu0 %v773_v0  ;;  %550 = vmatprep.subr.bf16.mxu1 %v773_v0  ;;  %v610_v12 = vld [vmem:[#allocation10 + $0x20] sm:$0xff]   ;;  %v605_v13 = vld [vmem:[#allocation9 + $0x38] sm:$0xff]   ;;  %v611_v14 = vld [vmem:[#allocation10 + $0x28] sm:$0xff]  }
  0x5e   :  { %v108_v15 = vld [vmem:[#allocation4] sm:$0xf]  ;;  %v614_v16 = vld [vmem:[#allocation12] sm:$0xff]   ;;  %v612_v17 = vld [vmem:[#allocation10 + $0x30] sm:$0xff]  }
  0x5f   :  { %v615_v18 = vld [vmem:[#allocation12 + $0x8] sm:$0xff]   ;;  %v613_v19 = vld [vmem:[#allocation10 + $0x38] sm:$0xff]   ;;  %v616_v20 = vld [vmem:[#allocation12 + $0x10] sm:$0xff]  }
  0x60   :  { %531 = vmatpush3.bf16.msra.mxu0 %v599_v2  ;;  %551 = vmatpush3.bf16.msra.mxu1 %v607_v6  ;;  %v125_v21 = vld [vmem:[#allocation7] sm:$0xf]  ;;  %v618_v23 = vld [vmem:[#allocation12 + $0x20] sm:$0xff]   ;;  %v619_v24 = vld [vmem:[#allocation12 + $0x28] sm:$0xff]  }
  0x61   :  { %532 = vmatprep.subr.bf16.mxu0 %v773_v0  ;;  %552 = vmatprep.subr.bf16.mxu1 %v773_v0  ;;  %v617_v22 = vld [vmem:[#allocation12 + $0x18] sm:$0xff]   ;;  %v620_v25 = vld [vmem:[#allocation12 + $0x30] sm:$0xff]  }
  0x62   :  { %v621_v26 = vld [vmem:[#allocation12 + $0x38] sm:$0xff]  }
  0x63   :  { %v474_v27 = vld [vmem:[%s946_s5] ss:$0 sm:$0xff] }
  0x64   :  { %533 = vmatpush3.bf16.msra.mxu0 %v600_v3  ;;  %553 = vmatpush3.bf16.msra.mxu1 %v608_v8  ;;  %v483_v40 = vld [vmem:[%s947_s6] ss:$0 sm:$0xff]  ;;  %s736_s6 = scalar_lea.vmem %s463_s23, 128 }
  0x65   :  { %534 = vmatprep.subr.bf16.mxu0 %v773_v0  ;;  %554 = vmatprep.subr.bf16.mxu1 %v773_v0  ;;  %v473_v45 = vld [vmem:[%s948_s7] ss:$0 sm:$0xff]  ;;  %p737_p12 = scmp.ne.s32.totalorder %s463_s23, %s736_s6  ;;  %p742_p0 = scmp.lt.s32.totalorder %s736_s6, %s736_s6 }
  0x67   :  { %p743_p1 = por %p742_p0, %p741_p13 }
  0x68   :  { %535 = vmatpush3.bf16.msra.mxu0 %v601_v5  ;;  %555 = vmatpush3.bf16.msra.mxu1 %v609_v10 }
  0x69   :  { %536 = vmatprep.subr.bf16.mxu0 %v773_v0  ;;  %556 = vmatprep.subr.bf16.mxu1 %v773_v0  ;;  %p744_p2 = pnand %p743_p1, %p737_p12 }
  0x6c   :  { %537 = vmatpush3.bf16.msra.mxu0 %v602_v7  ;;  %557 = vmatpush3.bf16.msra.mxu1 %v610_v12 }
  0x6d   :  { %538 = vmatprep.subr.bf16.mxu0 %v773_v0  ;;  %558 = vmatprep.subr.bf16.mxu1 %v773_v0 }
  0x70   :  { %539 = vmatpush3.bf16.msra.mxu0 %v603_v9  ;;  %559 = vmatpush3.bf16.msra.mxu1 %v611_v14 }
  0x71   :  { %540 = vmatprep.subr.bf16.mxu0 %v773_v0  ;;  %560 = vmatprep.subr.bf16.mxu1 %v773_v0 }
  0x74   :  { %541 = vmatpush3.bf16.msra.mxu0 %v604_v11  ;;  %561 = vmatpush3.bf16.msra.mxu1 %v612_v17 }
  0x75   :  { %542 = vmatprep.subr.bf16.mxu0 %v773_v0  ;;  %562 = vmatprep.subr.bf16.mxu1 %v773_v0 }
  0x78   :  { %543 = vmatpush3.bf16.msra.mxu0 %v605_v13  ;;  %563 = vmatpush3.bf16.msra.mxu1 %v613_v19 }
  0x79   :  { %568 = vmatprep.subr.bf16.mxu0 %v773_v0 }
  0x7b   :  { %545 = vmatmul.mubr.bf16.vlgmr.msra.gmra.mrb[0].mxu0 %v108_v15  ;;  %565 = vmatmul.mubr.bf16.vlgmr.msra.gmra.mrb[0].mxu1 %v125_v21 }
  0x7c   :  { %569 = vmatpush3.bf16.msra.mxu0 %v614_v16  ;;  %584 = vmatprep.mubr.msk.bf16.mxu0 %vm774_vm0, %v773_v0 }
  0x7d   :  { %570 = vmatprep.subr.bf16.mxu0 %v773_v0 }
  0x80   :  { %571 = vmatpush3.bf16.msra.mxu0 %v615_v18 }
  0x81   :  { %572 = vmatprep.subr.bf16.mxu0 %v773_v0 }
  0x84   :  { %573 = vmatpush3.bf16.msra.mxu0 %v616_v20 }
  0x85   :  { %574 = vmatprep.subr.bf16.mxu0 %v773_v0 }
  0x88   :  { %575 = vmatpush3.bf16.msra.mxu0 %v617_v22 }
  0x89   :  { %576 = vmatprep.subr.bf16.mxu0 %v773_v0 }
  0x8c   :  { %577 = vmatpush3.bf16.msra.mxu0 %v618_v23 }
  0x8d   :  { %578 = vmatprep.subr.bf16.mxu0 %v773_v0 }
  0x90   :  { %579 = vmatpush3.bf16.msra.mxu0 %v619_v24 }
  0x91   :  { %580 = vmatprep.subr.bf16.mxu0 %v773_v0 }
  0x94   :  { %581 = vmatpush3.bf16.msra.mxu0 %v620_v25 }
  0x95   :  { %582 = vmatprep.subr.bf16.mxu0 %v773_v0 }
  0x98   :  { %583 = vmatpush3.bf16.msra.mxu0 %v621_v26 }
 0x14e   :  { %v231_v28 = vpop.f32.mrb[0].mxu0  ;;  %v326_v36 = vpop.f32.mrb[0].mxu1 }
 0x14f   :  { %v232_v29 = vadd.f32 %v474_v27, %v231_v28  ;;  %v546_v30 = vpop.f32.mrb[1].mxu0  ;;  %v566_v37 = vpop.f32.mrb[1].mxu1  ;;  %v327_v41 = vadd.f32 %v483_v40, %v326_v36 }
 0x150   :  { %v234_v31 = vpop.f32.mrb[2].mxu0  ;;  %v329_v38 = vpop.f32.mrb[2].mxu1 }
 0x151   :  { %v339_v32 = vmax.f32 %v232_v29, 0.0  ;;  %v547_v33 = vpop.f32.mrb[3].mxu0  ;;  %v567_v39 = vpop.f32.mrb[3].mxu1  ;;  %v492_v42 = vmul.f32 -1.442695, %v327_v41 }
 0x153   :  { %v340_v34 = vmul.f32 %v339_v32, %v339_v32  ;;  %622 = vpow2.f32 %v492_v42 }
 0x155   :  { %v342_v35 = vpack.c.bf16 %v340_v34, %v340_v34 }
 0x157   :  { %585 = vmatmul.mubr.bf16.vlgmr.msra.gmra.mrb[4].mxu0 %v342_v35 }
 0x15d   :  { %v623_v43 = vpop.eup %622 }
 0x15e   :  { %v335_v44 = vadd.f32 1.0, %v623_v43 }
 0x160   :  { %624 = vrcp.f32 %v335_v44 }
 0x16a   :  { %v625_v46 = vpop.eup %624 }
 0x22a   :  { %v441_v47 = vpop.f32.mrb[4].mxu0 }
 0x22b   :  { %v447_v48 = vadd.f32 %v473_v45, %v441_v47  ;;  %v586_v49 = vpop.f32.mrb[5].mxu0 }
 0x22c   :  { %v444_v50 = vpop.f32.mrb[6].mxu0 }
 0x22d   :  { %v454_v51 = vmul.f32 %v625_v46, %v447_v48  ;;  %v587_v52 = vpop.f32.mrb[7].mxu0 }
 0x22f   :  { %455 = vst [vmem:[#allocation13] sm:$0xff] %v454_v51 }
 0x230   :  { %747 = shalt.err (!%p744_p2)
}
 0x231   :  { %s748_s25 = scalar_lea.hbm %s949_s8, 128 }
 0x232   :  { %p749_p3 = scmp.ne.s32.totalorder %s949_s8, %s748_s25  ;;  %p752_p4 = scmp.lt.u32.totalorder %s748_s25, %s949_s8 }
 0x234   :  { %p754_p5 = pnand %p752_p4, %p749_p3 }
 0x236   :  { %757 = shalt.err (!%p754_p5)
}
 0x237   :  { %465 = dma.vmem_to_hbm [thread:$0]  %s463_s23, 128, %s949_s8, [#allocation6]  }
 0x238   :  { %764 = dma.done.wait [#allocation6], 128  }
 0x239   :  { %765 = vsyncadd [#allocation6], 4294967168 }
 0x23a   :  { %469 = vsyncpa [#allocation5], 1 }
 0x23b   :  { %470 = vsyncpa [#allocation8], 1 }
 0x23c   :  { %471 = vsyncpa [#allocation11], 1 }
 0x23d   :  { %472 = vsyncpa [#allocation6], 1 }

</bundles_post_ra>
